<compile_context>
chip_gen: v7x
topology: tpu7x:2x2x1
jax: 0.10.0
libtpu: 0.0.40
codegen_flags: <defaults>
</compile_context>

<pallas_src>
import functools
import math

import jax
import jax.numpy as jnp
from jax import lax
from jax.experimental import pallas as pl
from jax.experimental.pallas import tpu as pltpu

_MASK_VALUE = -1e30                      # large finite negative avoids inf-inf NaNs
_VMEM_LIMIT = 32 * 1024 * 1024           # safe on v5e/v6e (128 MiB) and v7x (64 MiB)
_WEIGHT_RESIDENT_BYTES = 6 * 1024 * 1024 # below this, hold the GEMM weight resident
_SCORES_VMEM_BUDGET = 2 * 1024 * 1024    # cap for the f32 (hb, tq, tkv) scores temp


def _pick_block(n, max_block, multiple):
    """Largest divisor of n that is a multiple of `multiple` and <= max_block.

    Falls back to the full extent only when no such divisor exists, so long
    sequences keep bounded blocks instead of silently blowing the VMEM budget.
    """
    best = None
    d = multiple
    limit = min(n, max_block)
    while d <= limit:
        if n % d == 0:
            best = d
        d += multiple
    return best if best is not None else n


# ---------------------------------------------------------------------------
# Linear layer: y = x @ w + b  (used for c_attn and c_proj)
# ---------------------------------------------------------------------------
def _linear_resident_kernel(x_ref, w_ref, b_ref, o_ref):
    acc = jnp.dot(x_ref[...], w_ref[...], preferred_element_type=jnp.float32)
    o_ref[...] = (acc + b_ref[...].astype(jnp.float32)).astype(o_ref.dtype)


def _linear_streamed_kernel(x_ref, w_ref, b_ref, o_ref, acc_ref):
    k = pl.program_id(2)

    @pl.when(k == 0)
    def _init():
        acc_ref[...] = jnp.zeros_like(acc_ref)

    acc_ref[...] += jnp.dot(x_ref[...], w_ref[...],
                            preferred_element_type=jnp.float32)

    @pl.when(k == pl.num_programs(2) - 1)
    def _finalize():
        o_ref[...] = (acc_ref[...] + b_ref[...].astype(jnp.float32)
                      ).astype(o_ref.dtype)


def _linear(x2d, w, b):
    M, K = x2d.shape
    Kw, N = w.shape
    assert K == Kw and b.shape == (N,)
    b2d = b.reshape(1, N)
    tm = _pick_block(M, 512, 8)

    if w.size * w.dtype.itemsize <= _WEIGHT_RESIDENT_BYTES:
        # Weight-resident GEMM: constant-index weight BlockSpec -> whole weight
        # is DMA'd into VMEM once and revisited across all M tiles (no
        # re-streaming); x and the output are each streamed exactly once.
        return pl.pallas_call(
            _linear_resident_kernel,
            out_shape=jax.ShapeDtypeStruct((M, N), x2d.dtype),
            grid_spec=pltpu.PrefetchScalarGridSpec(
                num_scalar_prefetch=0,
                grid=(M // tm,),
                in_specs=[
                    pl.BlockSpec((tm, K), lambda i: (i, 0)),   # activations tile
                    pl.BlockSpec((K, N), lambda i: (0, 0)),    # resident weight
                    pl.BlockSpec((1, N), lambda i: (0, 0)),    # bias (lane-major)
                ],
                out_specs=pl.BlockSpec((tm, N), lambda i: (i, 0)),
            ),
            compiler_params=pltpu.CompilerParams(
                dimension_semantics=("parallel",),
                vmem_limit_bytes=_VMEM_LIMIT),
        )(x2d, w, b2d)

    # Streamed GEMM for large weights: (tm, tn, tk) tiles, f32 accumulator.
    tn = _pick_block(N, 512, 128)
    tk = _pick_block(K, 512, 128)
    grid = (M // tm, N // tn, K // tk)
    return pl.pallas_call(
        _linear_streamed_kernel,
        out_shape=jax.ShapeDtypeStruct((M, N), x2d.dtype),
        grid_spec=pltpu.PrefetchScalarGridSpec(
            num_scalar_prefetch=0,
            grid=grid,
            in_specs=[
                pl.BlockSpec((tm, tk), lambda i, j, k: (i, k)),
                pl.BlockSpec((tk, tn), lambda i, j, k: (k, j)),
                pl.BlockSpec((1, tn), lambda i, j, k: (0, j)),
            ],
            out_specs=pl.BlockSpec((tm, tn), lambda i, j, k: (i, j)),
            scratch_shapes=[pltpu.VMEM((tm, tn), jnp.float32)],
        ),
        compiler_params=pltpu.CompilerParams(
            dimension_semantics=("parallel", "parallel", "arbitrary"),
            vmem_limit_bytes=_VMEM_LIMIT),
    )(x2d, w, b2d)


# ---------------------------------------------------------------------------
# Flash attention (causal, online softmax, head-batched blocks)
# ---------------------------------------------------------------------------
def _flash_kernel(q_ref, k_ref, v_ref, o_ref, m_sc, l_sc, acc_sc, qs_sc,
                  *, scale, q_blk, kv_blk):
    ki = pl.program_id(3)
    nk = pl.num_programs(3)
    q_start = pl.program_id(2) * q_blk
    kv_start = ki * kv_blk

    @pl.when(ki == 0)
    def _init():
        m_sc[...] = jnp.full_like(m_sc, -jnp.inf)
        l_sc[...] = jnp.zeros_like(l_sc)
        acc_sc[...] = jnp.zeros_like(acc_sc)
        # 1/sqrt(D) folded into q once per q tile (q block is resident across
        # the kv axis); scaled in f32 then rounded once to the compute dtype.
        qs_sc[...] = (q_ref[...].astype(jnp.float32) * scale).astype(qs_sc.dtype)

    def _scores():
        # (hb, tq, D) x (hb, tkv, D) -> (hb, tq, tkv); f32 accumulation on MXU.
        return jnp.einsum("hqd,hkd->hqk", qs_sc[...], k_ref[...],
                          preferred_element_type=jnp.float32)

    def _update(s):
        m_prev = m_sc[...]
        m_new = jnp.maximum(m_prev, jnp.max(s, axis=-1, keepdims=True))
        alpha = jnp.exp(m_prev - m_new)
        p = jnp.exp(s - m_new)
        l_sc[...] = alpha * l_sc[...] + jnp.sum(p, axis=-1, keepdims=True)
        acc_sc[...] = alpha * acc_sc[...] + jnp.einsum(
            "hqk,hkd->hqd", p.astype(v_ref.dtype), v_ref[...],
            preferred_element_type=jnp.float32)
        m_sc[...] = m_new

    below_diag = kv_start + (kv_blk - 1) <= q_start              # fully visible
    on_diag = ((kv_start <= q_start + (q_blk - 1)) &
               (kv_start + (kv_blk - 1) > q_start))               # straddles diag
    # Tiles fully above the diagonal run neither branch (causal tile skip);
    # their K/V DMAs are also elided by the clamped index_maps in the wrapper.

    @pl.when(below_diag)
    def _full_tile():
        _update(_scores())

    @pl.when(on_diag)
    def _diag_tile():
        s = _scores()
        row = q_start + lax.broadcasted_iota(jnp.int32, s.shape, 1)
        col = kv_start + lax.broadcasted_iota(jnp.int32, s.shape, 2)
        _update(jnp.where(col <= row, s, _MASK_VALUE))

    @pl.when(ki == nk - 1)
    def _finalize():
        # Exact reciprocal on the f32 path (keeps the reference check tight);
        # EUP approx reciprocal on the bf16 fast path (error < bf16 precision).
        approx = jnp.dtype(o_ref.dtype) != jnp.dtype(jnp.float32)
        inv_l = pl.reciprocal(l_sc[...], approx=approx)
        o_ref[...] = (acc_sc[...] * inv_l).astype(o_ref.dtype)

    # TODO(synk): attn_dropout omitted (eval mode / attn_pdrop = 0).


def _flash_attention(q, k, v, *, scale):
    B, H, T, D = q.shape
    tq = _pick_block(T, 512, 8)
    tkv = _pick_block(T, 512, 8)

    # Batch several heads per grid step: amortizes the fixed per-step pipeline
    # overhead and enlarges each DMA / matmul (head_dim < 128 underfills the
    # 256-wide MXU on its own).  Bounded so the f32 scores temp stays ~2 MiB.
    hb = 1
    for c in range(1, H + 1):
        if H % c == 0 and c * tq * tkv * 4 <= _SCORES_VMEM_BUDGET:
            hb = c

    grid = (B, H // hb, T // tq, T // tkv)

    def last_kv_tile(i):
        # Last kv tile the i-th q tile can attend to under the causal mask.
        return ((i + 1) * tq - 1) // tkv

    q_spec = pl.BlockSpec((None, hb, tq, D), lambda b, h, i, j: (b, h, i, 0))
    o_spec = pl.BlockSpec((None, hb, tq, D), lambda b, h, i, j: (b, h, i, 0))
    # Clamp the kv block index: grid steps fully above the diagonal repeat the
    # previous block index, so Pallas elides their HBM->VMEM copies.
    kv_spec = pl.BlockSpec(
        (None, hb, tkv, D),
        lambda b, h, i, j: (b, h, jnp.minimum(j, last_kv_tile(i)), 0))

    kernel = functools.partial(_flash_kernel, scale=scale, q_blk=tq, kv_blk=tkv)
    return pl.pallas_call(
        kernel,
        out_shape=jax.ShapeDtypeStruct((B, H, T, D), q.dtype),
        grid_spec=pltpu.PrefetchScalarGridSpec(
            num_scalar_prefetch=0,
            grid=grid,
            in_specs=[q_spec, kv_spec, kv_spec],
            out_specs=o_spec,
            scratch_shapes=[
                pltpu.VMEM((hb, tq, 1), jnp.float32),   # running max m
                pltpu.VMEM((hb, tq, 1), jnp.float32),   # running denominator l
                pltpu.VMEM((hb, tq, D), jnp.float32),   # running numerator acc
                pltpu.VMEM((hb, tq, D), q.dtype),       # scaled q cached per q tile
            ],
        ),
        compiler_params=pltpu.CompilerParams(
            # Three parallel axes (B, head-groups, q tiles) so megacore / the
            # two v7x TensorCores shard the grid even at B == 1; the trailing
            # kv axis carries the online-softmax reduction.
            dimension_semantics=("parallel", "parallel", "parallel", "arbitrary"),
            vmem_limit_bytes=_VMEM_LIMIT),
    )(q, k, v)


# ---------------------------------------------------------------------------
# Full module forward
# ---------------------------------------------------------------------------
def causal_self_attention(x, w_attn, b_attn, w_proj, b_proj, *, n_head):
    """x: [B, T, C]; w_attn: [C, 3C]; b_attn: [3C]; w_proj: [C, C]; b_proj: [C]."""
    B, T, C = x.shape
    assert C % n_head == 0
    D = C // n_head
    scale = 1.0 / math.sqrt(D)

    # --- QKV projection (Pallas GEMM) ---
    qkv = _linear(x.reshape(B * T, C), w_attn, b_attn)            # (B*T, 3C)

    # Split heads.
    # TODO(synk): when D % 128 == 0 these transposes can be folded into the
    # attention BlockSpecs (index q/k/v + head straight out of the fused qkv);
    # for D < 128 the (8, 128) block-layout rule forces XLA-level transposes.
    qkv = qkv.reshape(B, T, 3, n_head, D)
    q = jnp.transpose(qkv[:, :, 0], (0, 2, 1, 3))                 # (B, H, T, D)
    k = jnp.transpose(qkv[:, :, 1], (0, 2, 1, 3))
    v = jnp.transpose(qkv[:, :, 2], (0, 2, 1, 3))

    # --- Flash attention (Pallas, online softmax, causal tile/DMA skipping) ---
    y = _flash_attention(q, k, v, scale=scale)                    # (B, H, T, D)

    # --- merge heads + output projection (Pallas GEMM) ---
    y = jnp.transpose(y, (0, 2, 1, 3)).reshape(B * T, C)
    out = _linear(y, w_proj, b_proj)                              # (B*T, C)
    # TODO(synk): resid_dropout omitted (eval mode / resid_pdrop = 0).
    return out.reshape(B, T, C)


# ---------------------------------------------------------------------------
# Pure-JAX reference
# ---------------------------------------------------------------------------
def _reference(x, w_attn, b_attn, w_proj, b_proj, n_head):
    B, T, C = x.shape
    D = C // n_head
    qkv = x @ w_attn + b_attn
    q, k, v = jnp.split(qkv, 3, axis=-1)
    q = q.reshape(B, T, n_head, D).transpose(0, 2, 1, 3)
    k = k.reshape(B, T, n_head, D).transpose(0, 2, 1, 3)
    v = v.reshape(B, T, n_head, D).transpose(0, 2, 1, 3)
    att = jnp.einsum('bhtd,bhsd->bhts', q, k) / math.sqrt(D)
    mask = jnp.tril(jnp.ones((T, T), bool))
    att = jnp.where(mask[None, None], att, -jnp.inf)
    att = jax.nn.softmax(att, axis=-1)
    y = jnp.einsum('bhts,bhsd->bhtd', att, v)
    y = y.transpose(0, 2, 1, 3).reshape(B, T, C)
    return y @ w_proj + b_proj


if __name__ == "__main__":
    # Full-precision f32 matmuls everywhere so the f32 comparison is tight
    # (the default TPU matmul precision would add ~1e-3 noise to the reference).
    jax.config.update("jax_default_matmul_precision", "highest")

    # Small config: batch=2, seq=8, n_embd=32, n_head=4 (head_dim=8).
    B, T, C, n_head = 2, 8, 32, 4

    key = jax.random.PRNGKey(0)
    kx, k1, k2, k3, k4 = jax.random.split(key, 5)
    x = jax.random.normal(kx, (B, T, C), dtype=jnp.float32)

    # Deterministic parameter init (synthetic; nn.Linear-like scale).
    w_attn = jax.random.normal(k1, (C, 3 * C), dtype=jnp.float32) * (1.0 / math.sqrt(C))
    b_attn = jax.random.normal(k2, (3 * C,), dtype=jnp.float32) * 0.02
    w_proj = jax.random.normal(k3, (C, C), dtype=jnp.float32) * (1.0 / math.sqrt(C))
    b_proj = jax.random.normal(k4, (C,), dtype=jnp.float32) * 0.02

    ref = _reference(x, w_attn, b_attn, w_proj, b_proj, n_head)

    # f32 path: exact reciprocal, f32 MXU accumulation -> tight agreement.
    out = causal_self_attention(x, w_attn, b_attn, w_proj, b_proj, n_head=n_head)
    out = jax.block_until_ready(out)
    assert out.shape == (B, T, C)
    assert jnp.allclose(out, ref, atol=5e-3, rtol=5e-3), "f32 mismatch vs reference"

    # bf16 fast path: MXU-native operands, f32 accumulation (loose tolerance).
    out_bf16 = causal_self_attention(
        x.astype(jnp.bfloat16),
        w_attn.astype(jnp.bfloat16), b_attn.astype(jnp.bfloat16),
        w_proj.astype(jnp.bfloat16), b_proj.astype(jnp.bfloat16),
        n_head=n_head)
    out_bf16 = jax.block_until_ready(out_bf16)
    assert jnp.allclose(out_bf16.astype(jnp.float32), ref, atol=0.15, rtol=0.15), \
        "bf16 mismatch vs reference"

    print("KERNEL_OK")
</pallas_src>

<mosaic_0001>
module attributes {stable_mosaic.version = 11 : i64} {
  func.func @_linear_resident_kernel(%arg0: i32, %arg1: memref<16x32xf32, #tpu.memory_space<vmem>>, %arg2: memref<32x96xf32, #tpu.memory_space<vmem>>, %arg3: memref<1x96xf32, #tpu.memory_space<vmem>>, %arg4: memref<16x96xf32, #tpu.memory_space<vmem>>) attributes {dimension_semantics = [#tpu.dimension_semantics<parallel>], iteration_bounds = array<i64: 1>, scalar_prefetch = 0 : i64, scratch_operands = 0 : i64, tpu.core_type = #tpu.core_type<tc>, window_params = [{transform_indices = @transform_0, window_bounds = array<i64: 16, 32>}, {pipeline_mode = #tpu.pipeline_mode<synchronous>, transform_indices = @transform_1, window_bounds = array<i64: 32, 96>}, {pipeline_mode = #tpu.pipeline_mode<synchronous>, transform_indices = @transform_2, window_bounds = array<i64: 1, 96>}, {transform_indices = @transform_3, window_bounds = array<i64: 16, 96>}]} {
    %c0 = arith.constant 0 : index
    %c0_0 = arith.constant 0 : index
    %0 = vector.load %arg1[%c0, %c0_0] : memref<16x32xf32, #tpu.memory_space<vmem>>, vector<16x32xf32>
    %c0_1 = arith.constant 0 : index
    %c0_2 = arith.constant 0 : index
    %1 = vector.load %arg2[%c0_1, %c0_2] : memref<32x96xf32, #tpu.memory_space<vmem>>, vector<32x96xf32>
    %cst = arith.constant dense<0.000000e+00> : vector<16x96xf32>
    %2 = tpu.matmul %0, %1, %cst {dimension_numbers = #tpu.dot_dimension_numbers<[1], [0], [0], [1], [0, 0, 1, 1], [], []>, precision = #tpu.contract_precision<fp32>} : vector<16x32xf32>, vector<32x96xf32>, vector<16x96xf32> -> vector<16x96xf32>
    %c0_3 = arith.constant 0 : index
    %c0_4 = arith.constant 0 : index
    %3 = vector.load %arg3[%c0_3, %c0_4] : memref<1x96xf32, #tpu.memory_space<vmem>>, vector<1x96xf32>
    %4 = vector.broadcast %3 : vector<1x96xf32> to vector<16x96xf32>
    %5 = arith.addf %2, %4 : vector<16x96xf32>
    %c0_5 = arith.constant 0 : index
    %c0_6 = arith.constant 0 : index
    %6 = vector.load %arg4[%c0_5, %c0_6] : memref<16x96xf32, #tpu.memory_space<vmem>>, vector<16x96xf32>
    tpu.vector_store %arg4[%c0_5, %c0_6], %5 {strides = array<i32>} : memref<16x96xf32, #tpu.memory_space<vmem>>, vector<16x96xf32>,
    return
  }
  func.func @transform_0(%arg0: i32) -> (i32, i32) {
    %c0_i32 = arith.constant 0 : i32
    %c0_i32_0 = arith.constant 0 : i32
    return %arg0, %c0_i32 : i32, i32
  }
  func.func @transform_1(%arg0: i32) -> (i32, i32) {
    %c0_i32 = arith.constant 0 : i32
    %c0_i32_0 = arith.constant 0 : i32
    %c0_i32_1 = arith.constant 0 : i32
    return %c0_i32, %c0_i32_0 : i32, i32
  }
  func.func @transform_2(%arg0: i32) -> (i32, i32) {
    %c0_i32 = arith.constant 0 : i32
    %c0_i32_0 = arith.constant 0 : i32
    %c0_i32_1 = arith.constant 0 : i32
    return %c0_i32, %c0_i32_0 : i32, i32
  }
  func.func @transform_3(%arg0: i32) -> (i32, i32) {
    %c0_i32 = arith.constant 0 : i32
    %c0_i32_0 = arith.constant 0 : i32
    return %arg0, %c0_i32 : i32, i32
  }
}

</mosaic_0001>

<bundles_post_ra>
// kernel: tpu_custom_call.1
= control target key start
LH: loop header
LB: loop body
LE: loop exit
PB: predicated region body
PF: predicated region fallthrough
CT: control target
= control target key end

     0   :  { %8 = vsyncpa [#allocation3], 0  ;;  %s937_s0 = inlined_call_operand.hbm [shape: f32[16,32], index: 0, kind: input, shape index: {}]   ;;  %s938_s1 = inlined_call_operand.hbm [shape: f32[32,96], index: 1, kind: input, shape index: {}]   ;;  %s939_s2 = inlined_call_operand.vmem [shape: f32[1,96], index: 2, kind: input, shape index: {}]   ;;  %s940_s3 = inlined_call_operand.hbm [shape: f32[16,96], index: 3, kind: output, shape index: {}]  }
   0x1   :  { %9 = vsyncpa [#allocation6], 0 }
   0x2   :  { %10 = vsyncpa [#allocation4], 0  ;;  %s852_s12 = smov [#allocation2]   ;;  %s780_s16 = scalar_lea.hbm %s937_s0, 256 }
   0x3   :  { %s16_s13 = sshll.u32 %s852_s12, 4  ;;  %p781_p0 = scmp.ne.s32.totalorder %s937_s0, %s780_s16  ;;  %s17_s13 = int_to_ptr.vmem [resolvable:$true] %s16_s13 }
   0x4   :  { %p784_p1 = scmp.lt.u32.totalorder %s780_s16, %s937_s0 }
   0x6   :  { %p786_p2 = pnand %p784_p1, %p781_p0 }
   0x8   :  { %789 = shalt.err (!%p786_p2)
}
   0x9   :  { %s790_s21 = scalar_lea.vmem %s17_s13, 256  ;;  %p795_p4 = scmp.lt.s32.totalorder %s17_s13, %s17_s13 }
   0xa   :  { %p791_p3 = scmp.ne.s32.totalorder %s17_s13, %s790_s21  ;;  %p796_p5 = scmp.lt.s32.totalorder %s790_s21, %s790_s21 }
   0xc   :  { %p797_p6 = por %p796_p5, %p795_p4 }
   0xe   :  { %p798_p7 = pnand %p797_p6, %p791_p3 }
  0x10   :  { %801 = shalt.err (!%p798_p7)
}
  0x11   :  { %s853_s22 = smov 128   ;;  %s854_s23 = smov 8  }
  0x12   :  { %22 = dma.hbm_to_vmem [thread:$0]  %s937_s0, 256, %s17_s13, [#allocation3], %s853_s22, %s853_s22, %s854_s23  }
  0x13   :  { %s855_s26 = smov [#allocation5]   ;;  %s802_s30 = scalar_lea.hbm %s938_s1, 512 }
  0x14   :  { %s28_s27 = sshll.u32 %s855_s26, 4  ;;  %p803_p8 = scmp.ne.s32.totalorder %s938_s1, %s802_s30  ;;  %s29_s27 = int_to_ptr.vmem [resolvable:$true] %s28_s27 }
  0x15   :  { %p806_p9 = scmp.lt.u32.totalorder %s802_s30, %s938_s1 }
  0x17   :  { %p808_p10 = pnand %p806_p9, %p803_p8 }
  0x19   :  { %811 = shalt.err (!%p808_p10)
}
  0x1a   :  { %s812_s8 = scalar_lea.vmem %s29_s27, 512  ;;  %p817_p12 = scmp.lt.s32.totalorder %s29_s27, %s29_s27 }
  0x1b   :  { %p813_p11 = scmp.ne.s32.totalorder %s29_s27, %s812_s8  ;;  %p818_p13 = scmp.lt.s32.totalorder %s812_s8, %s812_s8 }
  0x1d   :  { %p819_p0 = por %p818_p13, %p817_p12 }
  0x1f   :  { %p820_p1 = pnand %p819_p0, %p813_p11 }
  0x21   :  { %823 = shalt.err (!%p820_p1)
}
  0x22   :  { %34 = dma.hbm_to_vmem [thread:$0]  %s938_s1, 512, %s29_s27, [#allocation6], %s853_s22, %s853_s22, %s854_s23  }
  0x23   :  { %846 = dma.done.wait [#allocation3], 256  }
  0x24   :  { %847 = vsyncadd [#allocation3], 4294967040 }
  0x25   :  { %848 = dma.done.wait [#allocation6], 512  }
  0x26   :  { %849 = vsyncadd [#allocation6], 4294966784  ;;  %vm56_vm0 = vcmask 261120   ;;  %v45_v0 = vld [vmem:[#allocation5] sm:$0xff]  ;;  %v46_v1 = vld [vmem:[#allocation5 + $0x8] sm:$0xff]  ;;  %s856_s11 = smov [#allocation7]  }
  0x27   :  { %v47_v2 = vld [vmem:[#allocation5 + $0x10] sm:$0xff]  ;;  %v64_v3 = vand.u32 4294901760, %v45_v0  ;;  %v67_v4 = vand.u32 4294901760, %v46_v1  ;;  %v48_v5 = vld [vmem:[#allocation5 + $0x18] sm:$0xff]  ;;  %s599_s12 = sshll.u32 %s856_s11, 4  ;;  %vm591_vm1 = vcmask 785408   ;;  %s600_s12 = int_to_ptr.vmem [resolvable:$true] %s599_s12 }
  0x28   :  { %v70_v6 = vand.u32 4294901760, %v47_v2  ;;  %v43_v7 = vld [vmem:[#allocation2] sm:$0xff]  ;;  %v44_v8 = vld [vmem:[#allocation2 + $0x8] sm:$0xff]  ;;  %v73_v9 = vand.u32 4294901760, %v48_v5  ;;  %s824_s13 = scalar_lea.vmem %s600_s12, 256  ;;  %p829_p3 = scmp.lt.s32.totalorder %s600_s12, %s600_s12 }
  0x29   :  { %v58_v10 = vsel %vm56_vm0, %v43_v7, 0  ;;  %v61_v11 = vsel %vm56_vm0, %v44_v8, 0  ;;  %v715_v12 = vpack.c.bf16 %v67_v4, %v64_v3  ;;  %v154_v15 = vsub.f32 %v45_v0, %v64_v3  ;;  %v612_v46 = vld [vmem:[%s939_s2] ss:$0 sm:$0xff]  ;;  %p825_p2 = scmp.ne.s32.totalorder %s600_s12, %s824_s13  ;;  %p830_p4 = scmp.lt.s32.totalorder %s824_s13, %s824_s13 }
  0x2a   :  { %v907_v13 = vand.u32 4294901760, %v58_v10  ;;  %v909_v14 = vand.u32 4294901760, %v61_v11  ;;  %v719_v16 = vpack.c.bf16 %v73_v9, %v70_v6  ;;  %v161_v17 = vsub.f32 %v46_v1, %v67_v4 }
  0x2b   :  { %v168_v18 = vsub.f32 %v47_v2, %v70_v6  ;;  %v175_v19 = vsub.f32 %v48_v5, %v73_v9  ;;  %716 = vmatprep.subr.bf16.mxu1 %v715_v12  ;;  %740 = vmatprep.subr.bf16.mxu0 %v715_v12  ;;  %v155_v22 = vand.u32 4294901760, %v154_v15  ;;  %p831_p5 = por %p830_p4, %p829_p3 }
  0x2c   :  { %v133_v20 = vsub.f32 %v58_v10, %v907_v13  ;;  %v143_v21 = vsub.f32 %v61_v11, %v909_v14  ;;  %718 = vmatpush3.bf16.msra.mxu1 %v715_v12  ;;  %742 = vmatpush3.bf16.msra.mxu0 %v715_v12  ;;  %v162_v23 = vand.u32 4294901760, %v161_v17  ;;  %v731_v44 = vpack.c.bf16 %v161_v17, %v154_v15 }
  0x2d   :  { %v169_v24 = vand.u32 4294901760, %v168_v18  ;;  %v176_v25 = vand.u32 4294901760, %v175_v19  ;;  %720 = vmatprep.subr.bf16.mxu1 %v719_v16  ;;  %744 = vmatprep.subr.bf16.mxu0 %v719_v16  ;;  %v156_v28 = vsub.f32 %v154_v15, %v155_v22  ;;  %v735_v45 = vpack.c.bf16 %v175_v19, %v168_v18  ;;  %p832_p6 = pnand %p831_p5, %p825_p2 }
  0x2e   :  { %v134_v26 = vand.u32 4294901760, %v133_v20  ;;  %v144_v27 = vand.u32 4294901760, %v143_v21  ;;  %v163_v29 = vsub.f32 %v161_v17, %v162_v23  ;;  %v747_v30 = vpack.c.bf16 %v162_v23, %v155_v22 }
  0x2f   :  { %v170_v31 = vsub.f32 %v168_v18, %v169_v24  ;;  %v177_v32 = vsub.f32 %v175_v19, %v176_v25  ;;  %v157_v35 = vand.u32 4294901760, %v156_v28  ;;  %v751_v43 = vpack.c.bf16 %v176_v25, %v169_v24 }
  0x30   :  { %v135_v33 = vsub.f32 %v133_v20, %v134_v26  ;;  %690 = vmatprep.mubr.f32.mxu0 %v134_v26  ;;  %v145_v34 = vsub.f32 %v143_v21, %v144_v27  ;;  %722 = vmatpush3.bf16.msra.mxu1 %v719_v16  ;;  %v164_v36 = vand.u32 4294901760, %v163_v29 }
  0x31   :  { %746 = vmatpush3.bf16.msra.mxu0 %v719_v16  ;;  %v171_v37 = vand.u32 4294901760, %v170_v31  ;;  %v178_v38 = vand.u32 4294901760, %v177_v32 }
  0x32   :  { %v136_v39 = vand.u32 4294901760, %v135_v33  ;;  %v146_v40 = vand.u32 4294901760, %v145_v34  ;;  %748 = vmatprep.subr.bf16.mxu0 %v747_v30  ;;  %v723_v41 = vpack.c.bf16 %v164_v36, %v157_v35 }
  0x33   :  { %v727_v42 = vpack.c.bf16 %v178_v38, %v171_v37 }
  0x34   :  { %657 = vmatprep.mubr.f32.mxu1 %v136_v39  ;;  %691 = vmatmul.mubr.f32.vlgmr.msra.gmra.mrb[0].mxu0 %v144_v27 }
  0x35   :  { %658 = vmatmul.mubr.f32.vlgmr.msra.gmra.mrb[0].mxu1 %v146_v40  ;;  %724 = vmatprep.subr.bf16.mxu1 %v723_v41 }
  0x36   :  { %726 = vmatpush3.bf16.msra.mxu1 %v723_v41  ;;  %750 = vmatpush3.bf16.msra.mxu0 %v747_v30 }
  0x37   :  { %728 = vmatprep.subr.bf16.mxu1 %v727_v42  ;;  %752 = vmatprep.subr.bf16.mxu0 %v751_v43 }
  0x38   :  { %668 = vmatprep.mubr.f32.mxu1 %v907_v13  ;;  %701 = vmatprep.mubr.f32.mxu0 %v907_v13 }
  0x3a   :  { %730 = vmatpush3.bf16.msra.mxu1 %v727_v42  ;;  %754 = vmatpush3.bf16.msra.mxu0 %v751_v43 }
  0x3b   :  { %732 = vmatprep.subr.bf16.mxu1 %v731_v44  ;;  %756 = vmatprep.subr.bf16.mxu0 %v715_v12 }
  0x3d   :  { %669 = vmatmul.mubr.f32.vlgmr.msra.gmra.mrb[0].mxu1 %v909_v14  ;;  %702 = vmatmul.mubr.f32.vlgmr.msra.gmra.mrb[0].mxu0 %v909_v14 }
  0x3e   :  { %734 = vmatpush3.bf16.msra.mxu1 %v731_v44  ;;  %758 = vmatpush3.bf16.msra.mxu0 %v715_v12 }
  0x3f   :  { %736 = vmatprep.subr.bf16.mxu1 %v735_v45  ;;  %760 = vmatprep.subr.bf16.mxu0 %v719_v16 }
  0x40   :  { %679 = vmatprep.mubr.f32.mxu1 %v133_v20  ;;  %712 = vmatprep.mubr.f32.mxu0 %v907_v13 }
  0x42   :  { %738 = vmatpush3.bf16.msra.mxu1 %v735_v45  ;;  %762 = vmatpush3.bf16.msra.mxu0 %v719_v16 }
  0x45   :  { %680 = vmatmul.mubr.f32.vlgmr.msra.gmra.mrb[0].mxu1 %v143_v21  ;;  %713 = vmatmul.mubr.f32.vlgmr.msra.gmra.mrb[0].mxu0 %v909_v14 }
 0x118   :  { %v681_v47 = vpop.f32.mrb[0].mxu1  ;;  %v714_v48 = vpop.f32.mrb[0].mxu0 }
 0x119   :  { %v763_v49 = vadd.f32 %v681_v47, %v612_v46  ;;  %v325_v50 = vpop.f32.mrb[1].mxu1  ;;  %v581_v51 = vpop.f32.mrb[1].mxu0 }
 0x11a   :  { %v765_v52 = vadd.f32 %v612_v46, %v325_v50 }
 0x11b   :  { %v764_v53 = vadd.f32 %v763_v49, %v714_v48 }
 0x11c   :  { %v766_v54 = vadd.f32 %v765_v52, %v581_v51 }
 0x11d   :  { %593 = vst.msk [vmem:[#allocation7 + $0x8] sm:$0xff] %vm591_vm1, %v764_v53 }
 0x11e   :  { %592 = vst.msk [vmem:[#allocation7] sm:$0xff] %vm591_vm1, %v766_v54 }
 0x11f   :  { %835 = shalt.err (!%p832_p6)
}
 0x120   :  { %s836_s15 = scalar_lea.hbm %s940_s3, 256 }
 0x121   :  { %p837_p7 = scmp.ne.s32.totalorder %s940_s3, %s836_s15  ;;  %p840_p8 = scmp.lt.u32.totalorder %s836_s15, %s940_s3 }
 0x123   :  { %p842_p9 = pnand %p840_p8, %p837_p7 }
 0x125   :  { %845 = shalt.err (!%p842_p9)
}
 0x126   :  { %605 = dma.vmem_to_hbm [thread:$0]  %s600_s12, 256, %s940_s3, [#allocation4], %s853_s22, %s853_s22, %s854_s23  }
 0x127   :  { %850 = dma.done.wait [#allocation4], 256  }
 0x128   :  { %851 = vsyncadd [#allocation4], 4294967040 }
 0x129   :  { %609 = vsyncpa [#allocation3], 1 }
 0x12a   :  { %610 = vsyncpa [#allocation6], 1 }
 0x12b   :  { %611 = vsyncpa [#allocation4], 1 }

</bundles_post_ra>
